<compile_context>
chip_gen: v7x
topology: tpu7x:2x2x1
jax: 0.10.0
libtpu: 0.0.40
codegen_flags: <defaults>
</compile_context>

<pallas_src>
import functools

import jax
import jax.numpy as jnp
from jax.experimental import pallas as pl
from jax.experimental.pallas import tpu as pltpu

_LANES = 128
_MAX_BLK_ROWS = 8192                 # 8192 x 128 f32 = 4 MiB per input block
_VMEM_LIMIT_BYTES = 40 * 1024 * 1024  # fits v7x (64 MiB phys); > v5e 16 MiB default


def _row_multiple(dtype):
    """Minimum sublane-tile row multiple for a given dtype (8/16/32)."""
    return max(8, 32 // jnp.dtype(dtype).itemsize)


@functools.lru_cache(maxsize=None)
def _tensorcores_per_chip():
    """Best-effort TensorCore count per chip (v7x has 2, v5e/v6e have 1)."""
    try:
        info = pltpu.get_tpu_info()
        for attr in ("tensorcores_per_chip", "num_tensorcores", "num_cores",
                     "cores_per_chip"):
            v = getattr(info, attr, None)
            if isinstance(v, int) and v > 0:
                return v
    except Exception:
        pass
    try:
        kind = str(getattr(jax.devices()[0], "device_kind", "")).lower()
        if "v7" in kind:
            return 2
    except Exception:
        pass
    return 1


# --------------------------------------------------------------------------
# Kernels
# --------------------------------------------------------------------------
def _mse_single_block_kernel(x_ref, y_ref, out_ref):
    """Whole (rows, 128) input fits one block: fused diff-square-reduce."""
    d = x_ref[...].astype(jnp.float32) - y_ref[...].astype(jnp.float32)
    out_ref[0, 0] = jnp.sum(d * d)


def _mse_partial_kernel(x_ref, y_ref, out_ref, acc_ref, *,
                        rows, blk, blocks_per_split, mask_block):
    """Accumulate sum((x-y)^2) of one (blk, 128) block into an (8,128) scratch."""
    c = pl.program_id(0)
    j = pl.program_id(1)

    @pl.when(j == 0)
    def _init():
        acc_ref[...] = jnp.zeros_like(acc_ref)

    def _sq():
        d = x_ref[...].astype(jnp.float32) - y_ref[...].astype(jnp.float32)
        return d * d

    def _fold(v):
        # (blk, 128) -> (8, 128) via elementwise vreg adds (pure VPU).
        return jnp.sum(v.reshape(blk // 8, 8, _LANES), axis=0)

    if mask_block is None:
        # Exact tiling: no masking work anywhere in the steady state.
        acc_ref[...] += _fold(_sq())
    else:
        logical_block = c * blocks_per_split + j

        @pl.when(logical_block != mask_block)
        def _fast():
            acc_ref[...] += _fold(_sq())

        @pl.when(logical_block == mask_block)
        def _masked():
            row_ids = (logical_block * blk
                       + jax.lax.broadcasted_iota(jnp.int32, (blk, _LANES), 0))
            # Keep the mask as a select on the squared values (never fold it
            # into the subtraction): garbage rows of the partial boundary
            # block are discarded, not multiplied.
            acc_ref[...] += _fold(
                jnp.where(row_ids < rows, _sq(), jnp.float32(0.0)))

    @pl.when(j == pl.num_programs(1) - 1)
    def _finalize():
        # Single cross-lane/sublane reduce (8x128) per split -> SMEM scalar.
        out_ref[0, 0] = jnp.sum(acc_ref[...])


# --------------------------------------------------------------------------
# Wrappers
# --------------------------------------------------------------------------
def _pallas_sq_sum_2d(x2, y2, max_block_rows):
    """sum((x2 - y2)^2) over a (rows, 128) pair, accumulated in f32 on-chip."""
    rows = x2.shape[0]
    dtype = x2.dtype
    itemsize = jnp.dtype(dtype).itemsize
    n_elems = rows * _LANES
    cost = pl.CostEstimate(flops=3 * n_elems, transcendentals=0,
                           bytes_accessed=2 * itemsize * n_elems + 8)

    if rows <= max_block_rows:
        # Single full-extent block: one DMA per input, one reduce.
        out = pl.pallas_call(
            _mse_single_block_kernel,
            out_shape=jax.ShapeDtypeStruct((1, 1), jnp.float32),
            grid_spec=pltpu.PrefetchScalarGridSpec(
                num_scalar_prefetch=0,
                grid=(1,),
                in_specs=[pl.BlockSpec((rows, _LANES), lambda i: (0, 0)),
                          pl.BlockSpec((rows, _LANES), lambda i: (0, 0))],
                out_specs=pl.BlockSpec((1, 1), lambda i: (0, 0),
                                       memory_space=pltpu.SMEM)),
            compiler_params=pltpu.CompilerParams(
                dimension_semantics=("arbitrary",),
                vmem_limit_bytes=_VMEM_LIMIT_BYTES),
            cost_estimate=cost,
        )(x2, y2)
        return out[0, 0]

    row_mult = _row_multiple(dtype)
    assert max_block_rows % row_mult == 0, (
        f"max_block_rows={max_block_rows} must be a multiple of {row_mult} "
        f"for dtype {dtype}")

    blk = max_block_rows
    nblocks = pl.cdiv(rows, blk)

    # Split across TensorCores only when it cannot create duplicated reads.
    n_split = 2 if (_tensorcores_per_chip() >= 2 and nblocks % 2 == 0) else 1
    blocks_per_split = nblocks // n_split
    mask_block = (nblocks - 1) if rows % blk != 0 else None

    in_map = lambda c, j: (c * blocks_per_split + j, 0)  # noqa: E731

    kernel = functools.partial(
        _mse_partial_kernel, rows=rows, blk=blk,
        blocks_per_split=blocks_per_split, mask_block=mask_block)

    partials = pl.pallas_call(
        kernel,
        out_shape=jax.ShapeDtypeStruct((n_split, 1), jnp.float32),
        grid_spec=pltpu.PrefetchScalarGridSpec(
            num_scalar_prefetch=0,
            grid=(n_split, blocks_per_split),
            in_specs=[pl.BlockSpec((blk, _LANES), in_map),
                      pl.BlockSpec((blk, _LANES), in_map)],
            out_specs=pl.BlockSpec((1, 1), lambda c, j: (c, 0),
                                   memory_space=pltpu.SMEM),
            scratch_shapes=[pltpu.VMEM((8, _LANES), jnp.float32)],
        ),
        compiler_params=pltpu.CompilerParams(
            dimension_semantics=("parallel", "arbitrary"),
            vmem_limit_bytes=_VMEM_LIMIT_BYTES),
        cost_estimate=cost,
        # TODO(synk): on v7x, consider pltpu.CORE_PARALLEL for the split axis
        # if plain "parallel" does not shard the two TensorCores.
    )(x2, y2)
    return jnp.sum(partials)


def _sq_diff_sum(x, y, max_block_rows):
    """sum((x - y)^2) over all elements, f32 accumulation."""
    flat_x = x.reshape(-1)
    flat_y = y.reshape(-1)
    n = flat_x.shape[0]
    rows = n // _LANES
    n_main = rows * _LANES

    total = jnp.float32(0.0)
    if n_main > 0:
        if n_main == n:
            x_main, y_main = flat_x, flat_y
        else:
            x_main, y_main = flat_x[:n_main], flat_y[:n_main]
        x2 = x_main.reshape(rows, _LANES)
        y2 = y_main.reshape(rows, _LANES)
        total = total + _pallas_sq_sum_2d(x2, y2, max_block_rows)
    if n_main < n:
        # <128-element ragged tail in plain jnp (avoids padding / extra HBM
        # copies of the full inputs).
        tx = flat_x[n_main:].astype(jnp.float32)
        ty = flat_y[n_main:].astype(jnp.float32)
        total = total + jnp.sum((tx - ty) ** 2)
    return total


@functools.partial(jax.jit,
                   static_argnames=("ratio", "reduction", "max_block_rows"))
def mse_loss_pallas(x, y, ratio=1.0, reduction="mean",
                    max_block_rows=_MAX_BLK_ROWS):
    assert x.shape == y.shape, "input and target must have the same shape"
    n_elems = x.size
    assert n_elems > 0, "empty input not supported"

    sq_sum = _sq_diff_sum(x, y, max_block_rows)

    if reduction == "mean":
        loss = sq_sum / jnp.float32(n_elems)
    elif reduction == "sum":
        loss = sq_sum
    else:
        # TODO(synk): reduction='none' (elementwise output) not implemented.
        raise NotImplementedError(f"reduction={reduction!r}")

    return jnp.float32(ratio) * loss


class MSELoss:
    """Mirror of the PyTorch module's interface (forward only)."""

    def __init__(self, ratio=1, size_average=None, reduce=None, reduction="mean"):
        self.ratio = ratio
        self.size_average = size_average
        self.reduce = reduce
        self.reduction = reduction

    def __call__(self, input, target, avg_factor=None):
        # TODO(synk): avg_factor is ignored, matching the reference module.
        return mse_loss_pallas(
            input, target, ratio=float(self.ratio), reduction=self.reduction
        )


if __name__ == "__main__":
    key = jax.random.PRNGKey(0)
    k1, k2 = jax.random.split(key)

    # Main case: NCHW inputs, as a typical regression head would produce.
    x = jax.random.normal(k1, (2, 4, 16, 16), dtype=jnp.float32)
    t = jax.random.normal(k2, (2, 4, 16, 16), dtype=jnp.float32)

    loss_fn = MSELoss(ratio=1, reduction="mean")
    loss = loss_fn(x, t)
    jax.block_until_ready(loss)
    ref = jnp.mean((x - t) ** 2)
    assert jnp.allclose(loss, ref, rtol=1e-5, atol=1e-6), (loss, ref)

    # Extra small-shape checks exercising the other code paths.
    # 1) Multi-block path with exact tiling (no masking, fast steady state).
    k3, k4 = jax.random.split(k2)
    xa = jax.random.normal(k3, (4, 4, 32, 32), dtype=jnp.float32)
    ta = jax.random.normal(k4, (4, 4, 32, 32), dtype=jnp.float32)
    la = mse_loss_pallas(xa, ta, ratio=1.0, reduction="mean", max_block_rows=32)
    assert jnp.allclose(la, jnp.mean((xa - ta) ** 2), rtol=1e-5, atol=1e-6)

    # 2) Multi-block path with a partial last block (masked edge block only).
    k5, k6 = jax.random.split(k4)
    xb = jax.random.normal(k5, (2, 4, 16, 20), dtype=jnp.float32)
    tb = jax.random.normal(k6, (2, 4, 16, 20), dtype=jnp.float32)
    lb = mse_loss_pallas(xb, tb, ratio=1.0, reduction="mean", max_block_rows=8)
    assert jnp.allclose(lb, jnp.mean((xb - tb) ** 2), rtol=1e-5, atol=1e-6)

    # 3) Ragged element count (not a multiple of 128) -> aligned prefix + jnp tail.
    k7, k8 = jax.random.split(k6)
    xc = jax.random.normal(k7, (3, 5, 7, 11), dtype=jnp.float32)
    tc = jax.random.normal(k8, (3, 5, 7, 11), dtype=jnp.float32)
    lc = mse_loss_pallas(xc, tc, ratio=2.0, reduction="mean")
    assert jnp.allclose(lc, 2.0 * jnp.mean((xc - tc) ** 2), rtol=1e-5, atol=1e-6)

    # 4) bf16 inputs exercise the dtype-derived row multiple (16 for 2-byte types).
    k9, k10 = jax.random.split(k8)
    xd = jax.random.normal(k9, (4, 4, 32, 32), dtype=jnp.bfloat16)
    td = jax.random.normal(k10, (4, 4, 32, 32), dtype=jnp.bfloat16)
    ld = mse_loss_pallas(xd, td, ratio=1.0, reduction="mean", max_block_rows=32)
    refd = jnp.mean((xd.astype(jnp.float32) - td.astype(jnp.float32)) ** 2)
    assert jnp.allclose(ld, refd, rtol=1e-4, atol=1e-6)

    jax.block_until_ready((la, lb, lc, ld))
    print("KERNEL_OK")
</pallas_src>

<mosaic_0001>
module attributes {stable_mosaic.version = 11 : i64} {
  func.func @_mse_single_block_kernel(%arg0: i32, %arg1: memref<16x128xf32, #tpu.memory_space<vmem>>, %arg2: memref<16x128xf32, #tpu.memory_space<vmem>>, %arg3: memref<1x1xf32, #tpu.memory_space<smem>>) attributes {dimension_semantics = [#tpu.dimension_semantics<arbitrary>], iteration_bounds = array<i64: 1>, scalar_prefetch = 0 : i64, scratch_operands = 0 : i64, tpu.core_type = #tpu.core_type<tc>, window_params = [{pipeline_mode = #tpu.pipeline_mode<synchronous>, transform_indices = @transform_0, window_bounds = array<i64: 16, 128>}, {pipeline_mode = #tpu.pipeline_mode<synchronous>, transform_indices = @transform_1, window_bounds = array<i64: 16, 128>}, {transform_indices = @transform_2, window_bounds = array<i64: 1, 1>}]} {
    %c0 = arith.constant 0 : index
    %c0_0 = arith.constant 0 : index
    %0 = vector.load %arg1[%c0, %c0_0] : memref<16x128xf32, #tpu.memory_space<vmem>>, vector<16x128xf32>
    %c0_1 = arith.constant 0 : index
    %c0_2 = arith.constant 0 : index
    %1 = vector.load %arg2[%c0_1, %c0_2] : memref<16x128xf32, #tpu.memory_space<vmem>>, vector<16x128xf32>
    %2 = arith.subf %0, %1 : vector<16x128xf32>
    %3 = arith.mulf %2, %2 : vector<16x128xf32>
    %4 = vector.shape_cast %3 : vector<16x128xf32> to vector<1x16x128xf32>
    %cst = arith.constant dense<0.000000e+00> : vector<1xf32>
    %5 = vector.multi_reduction <add>, %4, %cst [1, 2] : vector<1x16x128xf32> to vector<1xf32>
    %6 = vector.shape_cast %5 : vector<1xf32> to vector<1x1x1xf32>
    %7 = vector.extract %6[0, 0, 0] : f32 from vector<1x1x1xf32>
    %c0_3 = arith.constant 0 : index
    %c0_4 = arith.constant 0 : index
    %8 = memref.load %arg3[%c0_3, %c0_4] : memref<1x1xf32, #tpu.memory_space<smem>>
    memref.store %7, %arg3[%c0_3, %c0_4] : memref<1x1xf32, #tpu.memory_space<smem>>
    return
  }
  func.func @transform_0(%arg0: i32) -> (i32, i32) {
    %c0_i32 = arith.constant 0 : i32
    %c0_i32_0 = arith.constant 0 : i32
    %c0_i32_1 = arith.constant 0 : i32
    return %c0_i32, %c0_i32_0 : i32, i32
  }
  func.func @transform_1(%arg0: i32) -> (i32, i32) {
    %c0_i32 = arith.constant 0 : i32
    %c0_i32_0 = arith.constant 0 : i32
    %c0_i32_1 = arith.constant 0 : i32
    return %c0_i32, %c0_i32_0 : i32, i32
  }
  func.func @transform_2(%arg0: i32) -> (i32, i32) {
    %c0_i32 = arith.constant 0 : i32
    %c0_i32_0 = arith.constant 0 : i32
    %c0_i32_1 = arith.constant 0 : i32
    return %c0_i32, %c0_i32_0 : i32, i32
  }
}

</mosaic_0001>

<bundles_post_ra>
// kernel: mse_loss_pallas.1
= control target key start
LH: loop header
LB: loop body
LE: loop exit
PB: predicated region body
PF: predicated region fallthrough
CT: control target
= control target key end

     0   :  { %s100_s0 = inlined_call_operand.vmem [shape: f32[16,128], index: 0, kind: input, shape index: {}]   ;;  %s101_s1 = inlined_call_operand.vmem [shape: f32[16,128], index: 1, kind: input, shape index: {}]   ;;  %s102_s2 = inlined_call_operand.hbm [shape: f32[1,1], index: 2, kind: output, shape index: {}]  }
   0x1   :  { %v12_v0 = vld [vmem:[%s100_s0] sm:$0xff]  ;;  %v13_v1 = vld [vmem:[%s100_s0 + $0x8] sm:$0xff] }
   0x2   :  { %v14_v2 = vld [vmem:[%s101_s1] sm:$0xff]  ;;  %v15_v3 = vld [vmem:[%s101_s1 + $0x8] sm:$0xff] }
   0x3   :  { %v16_v4 = vsub.f32 %v12_v0, %v14_v2 }
   0x4   :  { %7 = vsyncpa [#allocation3], 0  ;;  %v17_v5 = vsub.f32 %v13_v1, %v15_v3  ;;  %s48_s1 = scalar_lea.hbm %s102_s2, 16 }
   0x5   :  { %v18_v6 = vmul.f32 %v16_v4, %v16_v4  ;;  %p49_p0 = scmp.ne.s32.totalorder %s102_s2, %s48_s1  ;;  %p52_p1 = scmp.lt.u32.totalorder %s48_s1, %s102_s2 }
   0x6   :  { %v19_v7 = vmul.f32 %v17_v5, %v17_v5 }
   0x7   :  { %p54_p2 = pnand %p52_p1, %p49_p0 }
   0x8   :  { %v20_v8 = vadd.f32 %v19_v7, %v18_v6 }
   0xa   :  { %21 = vadd.xlane.f32.xlu0 %v20_v8 }
  0x97   :  { %v22_v9 = vpop.xlane.xlu0 %21 }
  0x98   :  { %v23_v10 = vrot.slane %v22_v9, 4 }
  0x9a   :  { %v24_v11 = vadd.f32 %v23_v10, %v22_v9 }
  0x9c   :  { %v25_v12 = vrot.slane %v24_v11, 2 }
  0x9e   :  { %v26_v13 = vadd.f32 %v25_v12, %v24_v11 }
  0xa0   :  { %v27_v14 = vrot.slane %v26_v13, 1 }
  0xa2   :  { %v28_v15 = vadd.f32 %v27_v14, %v26_v13 }
  0xa4   :  { %45 = vpush %v28_v15 }
  0xd5   :  { %s46_s0 = spop %45 }
  0xd6   :  { %31 = sst [smem:[#allocation2]] %s46_s0 }
  0xd7   :  { %57 = shalt.err (!%p54_p2)
}
  0xd8   :  { %s60_s23 = smov [#allocation2]  }
  0xd9   :  { %39 = dma.smem_to_hbm %s60_s23, 16, %s102_s2, [#allocation3]  }
  0xda   :  { %58 = dma.done.wait [#allocation3], 16  }
  0xdb   :  { %59 = vsyncadd [#allocation3], 4294967280 }
  0xdc   :  { %43 = sfence }
  0xdd   :  { %44 = vsyncpa [#allocation3], 1 }

</bundles_post_ra>
